<compile_context>
chip_gen: v7x
topology: tpu7x:2x2x1
jax: 0.10.0
libtpu: 0.0.40
codegen_flags: <defaults>
</compile_context>

<pallas_src>
import functools

import jax
import jax.numpy as jnp
from jax.experimental import pallas as pl
from jax.experimental.pallas import tpu as pltpu


def _round_up(x: int, m: int) -> int:
    return ((x + m - 1) // m) * m


def _ce_label_smooth_kernel(logits_ref, targets_ref, out_ref, *,
                            epsilon: float, num_classes: int, batch: int):
    # logits_ref: (TB, K) native dtype; targets_ref: (TB, 1) int32
    tb, k = logits_ref.shape

    # Widen once; lane reductions run in f32 for accuracy (the HBM stream
    # already happened in the native dtype via the BlockSpec DMA).
    x = logits_ref[...].astype(jnp.float32)                       # (TB, K)
    t = targets_ref[...]                                          # (TB, 1)

    # (1, K) lane iota broadcast against (TB, 1) targets: no (TB,K) int temp.
    class_ids = jax.lax.broadcasted_iota(jnp.int32, (1, k), 1)    # (1, K)
    tgt_mask = class_ids == t                                     # (TB, K) bool

    # Three independent lane reductions on x (overlap on the XLU).
    m = jnp.max(x, axis=1, keepdims=True)                         # (TB, 1)
    sum_x = jnp.sum(x, axis=1, keepdims=True)                     # (TB, 1)
    x_t = jnp.sum(jnp.where(tgt_mask, x, 0.0), axis=1, keepdims=True)

    # Only the exp-sum depends on the max.
    s = jnp.sum(jnp.exp(x - m), axis=1, keepdims=True)            # (TB, 1)
    lse = m + jnp.log(s)                                          # (TB, 1)

    # loss = -sum_k smooth_k * log_softmax_k
    #      = -[(1-eps)*(x_t - lse) + (eps/K)*(sum_x - K*lse)]
    kf = float(num_classes)
    loss = -((1.0 - epsilon) * (x_t - lse)
             + (epsilon / kf) * (sum_x - kf * lse))                # (TB, 1)

    # Zero rows that belong to grid padding (last partial tile).
    row_ids = (pl.program_id(0) * tb
               + jax.lax.broadcasted_iota(jnp.int32, (tb, 1), 0))
    loss = jnp.where(row_ids < batch, loss, 0.0)

    # Lane-dense store: (TB, 1) column -> (1, TB) row (one XLU relayout), so
    # the output write uses wide vector stores instead of width-1 vst.msk.
    out_ref[...] = loss.reshape(1, tb).astype(out_ref.dtype)


def _vmem_capacity_bytes() -> int:
    try:
        return int(pltpu.get_tpu_info().vmem_capacity_bytes)
    except Exception:
        return 64 * 1024 * 1024        # conservative (v7x-sized) fallback


def _choose_block_batch(batch: int, num_classes: int, itemsize: int,
                        vmem_cap: int) -> int:
    """Batch tile: multiple of 8 (16 for 2-byte dtypes), VMEM-budget aware."""
    row_mult = 16 if itemsize == 2 else 8
    small_vmem = vmem_cap <= 96 * 1024 * 1024          # v7x-class (64 MiB)
    budget = (12 if small_vmem else 24) * 1024 * 1024
    # Per row: double-buffered native-dtype input tile + ~4 full-width f32
    # temporaries (widened x, exp(x-m), masked select, fused broadcasts).
    per_row = 2 * num_classes * itemsize + 16 * num_classes + 64
    tb = max(row_mult, budget // per_row)
    tb = (tb // row_mult) * row_mult
    tb = min(tb, 1024)                                  # amortize ~0.35us/step
    b_pad = _round_up(batch, row_mult)
    tb = min(tb, b_pad)
    if small_vmem and batch >= 2 * row_mult:
        # v7x has 2 TensorCores per chip: keep >= 2 grid steps so both work.
        tb = min(tb, _round_up(-(-batch // 2), row_mult))
    return max(row_mult, tb)


def cross_entropy_label_smooth(logits, targets, *, num_classes, epsilon=0.1,
                               reduction=True, block_batch=None):
    """logits: (B, K) float (f32 or bf16); targets: (B,) int class ids."""
    B, K = logits.shape
    assert K == num_classes
    targets2d = targets.astype(jnp.int32).reshape(B, 1)

    itemsize = jnp.dtype(logits.dtype).itemsize
    vmem_cap = _vmem_capacity_bytes()
    small_vmem = vmem_cap <= 96 * 1024 * 1024
    tb = block_batch or _choose_block_batch(B, K, itemsize, vmem_cap)
    num_tiles = pl.cdiv(B, tb)

    kernel = functools.partial(
        _ce_label_smooth_kernel,
        epsilon=float(epsilon), num_classes=int(num_classes), batch=int(B))

    cost = pl.CostEstimate(
        flops=6 * B * K,
        transcendentals=B * K,
        bytes_accessed=B * K * itemsize + B * 4 + num_tiles * tb * 4,
    )

    per_out = pl.pallas_call(
        kernel,
        # Lane-dense per-sample losses: row i holds losses of tile i.
        out_shape=jax.ShapeDtypeStruct((num_tiles, tb), jnp.float32),
        grid=(num_tiles,),
        in_specs=[
            pl.BlockSpec((tb, K), lambda i: (i, 0)),
            pl.BlockSpec((tb, 1), lambda i: (i, 0)),
        ],
        out_specs=pl.BlockSpec((1, tb), lambda i: (i, 0)),
        compiler_params=pltpu.CompilerParams(
            dimension_semantics=("parallel",),
            vmem_limit_bytes=(48 if small_vmem else 64) * 1024 * 1024),
        cost_estimate=cost,
    )(logits, targets2d)

    per = per_out.reshape(-1)[:B]
    if reduction:
        return jnp.mean(per)
    return per


def _reference(logits, targets, num_classes, epsilon=0.1, reduction=True):
    x = logits.astype(jnp.float32)
    log_probs = jax.nn.log_softmax(x, axis=1)
    onehot = jax.nn.one_hot(targets, num_classes, dtype=jnp.float32)
    smooth = (1.0 - epsilon) * onehot + epsilon / num_classes
    loss = jnp.sum(-smooth * log_probs, axis=1)
    return jnp.mean(loss) if reduction else loss


if __name__ == "__main__":
    key = jax.random.PRNGKey(0)
    k1, k2, k3, k4 = jax.random.split(key, 4)

    # Small shapes consistent with the module's forward.
    batch, num_classes = 8, 32
    logits = jax.random.normal(k1, (batch, num_classes), dtype=jnp.float32)
    targets = jax.random.randint(k2, (batch,), 0, num_classes, dtype=jnp.int32)

    out = cross_entropy_label_smooth(
        logits, targets, num_classes=num_classes, epsilon=0.1, reduction=True)
    out = jax.block_until_ready(out)
    ref = _reference(logits, targets, num_classes, epsilon=0.1, reduction=True)
    assert jnp.allclose(out, ref, rtol=1e-5, atol=1e-5), (out, ref)

    # no-reduction path
    out_nr = jax.block_until_ready(cross_entropy_label_smooth(
        logits, targets, num_classes=num_classes, epsilon=0.1, reduction=False))
    ref_nr = _reference(logits, targets, num_classes, epsilon=0.1, reduction=False)
    assert jnp.allclose(out_nr, ref_nr, rtol=1e-5, atol=1e-5)

    # Ragged batch (B not a multiple of the tile) exercises the padded-row
    # mask; bf16 logits exercise the native-dtype input path (widened to f32
    # inside the kernel).
    batch2, num_classes2 = 13, 40
    logits2 = jax.random.normal(k3, (batch2, num_classes2), dtype=jnp.bfloat16)
    targets2 = jax.random.randint(k4, (batch2,), 0, num_classes2, dtype=jnp.int32)
    out2 = jax.block_until_ready(cross_entropy_label_smooth(
        logits2, targets2, num_classes=num_classes2, epsilon=0.1,
        reduction=False))
    ref2 = _reference(logits2, targets2, num_classes2, epsilon=0.1,
                      reduction=False)
    assert jnp.allclose(out2, ref2, rtol=2e-2, atol=2e-2), (out2, ref2)

    print("KERNEL_OK")
</pallas_src>

<mosaic_0001>
module attributes {stable_mosaic.version = 11 : i64} {
  func.func @_ce_label_smooth_kernel(%arg0: i32, %arg1: memref<8x32xf32, #tpu.memory_space<vmem>>, %arg2: memref<8x1xi32, #tpu.memory_space<vmem>>, %arg3: memref<1x8xf32, #tpu.memory_space<vmem>>) attributes {dimension_semantics = [#tpu.dimension_semantics<parallel>], iteration_bounds = array<i64: 1>, scalar_prefetch = 0 : i64, scratch_operands = 0 : i64, tpu.core_type = #tpu.core_type<tc>, window_params = [{transform_indices = @transform_0, window_bounds = array<i64: 8, 32>}, {transform_indices = @transform_1, window_bounds = array<i64: 8, 1>}, {transform_indices = @transform_2, window_bounds = array<i64: 1, 8>}]} {
    %c0 = arith.constant 0 : index
    %c0_0 = arith.constant 0 : index
    %0 = vector.load %arg1[%c0, %c0_0] : memref<8x32xf32, #tpu.memory_space<vmem>>, vector<8x32xf32>
    %c0_1 = arith.constant 0 : index
    %c0_2 = arith.constant 0 : index
    %1 = vector.load %arg2[%c0_1, %c0_2] : memref<8x1xi32, #tpu.memory_space<vmem>>, vector<8x1xi32>
    %2 = tpu.iota {dimensions = array<i32: 1>} : vector<1x32xi32>
    %3 = vector.broadcast %2 : vector<1x32xi32> to vector<8x32xi32>
    %4 = vector.broadcast %1 : vector<8x1xi32> to vector<8x32xi32>
    %5 = arith.cmpi eq, %3, %4 : vector<8x32xi32>
    %cst = arith.constant dense<0xFF800000> : vector<8xf32>
    %6 = vector.multi_reduction <maximumf>, %0, %cst [1] : vector<8x32xf32> to vector<8xf32>
    %7 = vector.shape_cast %6 : vector<8xf32> to vector<8x1xf32>
    %cst_3 = arith.constant dense<0.000000e+00> : vector<8xf32>
    %8 = vector.multi_reduction <add>, %0, %cst_3 [1] : vector<8x32xf32> to vector<8xf32>
    %9 = vector.shape_cast %8 : vector<8xf32> to vector<8x1xf32>
    %cst_4 = arith.constant 0.000000e+00 : f32
    %10 = vector.broadcast %cst_4 : f32 to vector<8x32xf32>
    %11 = arith.select %5, %0, %10 : vector<8x32xi1>, vector<8x32xf32>
    %cst_5 = arith.constant dense<0.000000e+00> : vector<8xf32>
    %12 = vector.multi_reduction <add>, %11, %cst_5 [1] : vector<8x32xf32> to vector<8xf32>
    %13 = vector.shape_cast %12 : vector<8xf32> to vector<8x1xf32>
    %14 = vector.broadcast %7 : vector<8x1xf32> to vector<8x32xf32>
    %15 = arith.subf %0, %14 : vector<8x32xf32>
    %16 = math.exp %15 : vector<8x32xf32>
    %cst_6 = arith.constant dense<0.000000e+00> : vector<8xf32>
    %17 = vector.multi_reduction <add>, %16, %cst_6 [1] : vector<8x32xf32> to vector<8xf32>
    %18 = vector.shape_cast %17 : vector<8xf32> to vector<8x1xf32>
    %19 = math.log %18 : vector<8x1xf32>
    %20 = arith.addf %7, %19 : vector<8x1xf32>
    %21 = arith.subf %13, %20 : vector<8x1xf32>
    %cst_7 = arith.constant 0.899999976 : f32
    %22 = vector.broadcast %cst_7 : f32 to vector<8x1xf32>
    %23 = arith.mulf %22, %21 : vector<8x1xf32>
    %cst_8 = arith.constant 3.200000e+01 : f32
    %24 = vector.broadcast %cst_8 : f32 to vector<8x1xf32>
    %25 = arith.mulf %24, %20 : vector<8x1xf32>
    %26 = arith.subf %9, %25 : vector<8x1xf32>
    %cst_9 = arith.constant 3.125000e-03 : f32
    %27 = vector.broadcast %cst_9 : f32 to vector<8x1xf32>
    %28 = arith.mulf %27, %26 : vector<8x1xf32>
    %29 = arith.addf %23, %28 : vector<8x1xf32>
    %cst_10 = arith.constant 0.000000e+00 : f32
    %30 = vector.broadcast %cst_10 : f32 to vector<8x1xf32>
    %31 = arith.subf %30, %29 : vector<8x1xf32>
    %c8_i32 = arith.constant 8 : i32
    %32 = arith.muli %arg0, %c8_i32 : i32
    %33 = tpu.iota {dimensions = array<i32: 0>} : vector<8x1xi32>
    %34 = vector.broadcast %32 : i32 to vector<8x1xi32>
    %35 = arith.addi %34, %33 : vector<8x1xi32>
    %c8_i32_11 = arith.constant 8 : i32
    %36 = vector.broadcast %c8_i32_11 : i32 to vector<8x1xi32>
    %37 = arith.cmpi slt, %35, %36 : vector<8x1xi32>
    %cst_12 = arith.constant 0.000000e+00 : f32
    %38 = vector.broadcast %cst_12 : f32 to vector<8x1xf32>
    %39 = arith.select %37, %31, %38 : vector<8x1xi1>, vector<8x1xf32>
    %40 = vector.shape_cast %39 : vector<8x1xf32> to vector<1x8xf32>
    %c0_13 = arith.constant 0 : index
    %c0_14 = arith.constant 0 : index
    %41 = vector.load %arg3[%c0_13, %c0_14] : memref<1x8xf32, #tpu.memory_space<vmem>>, vector<1x8xf32>
    tpu.vector_store %arg3[%c0_13, %c0_14], %40 {strides = array<i32>} : memref<1x8xf32, #tpu.memory_space<vmem>>, vector<1x8xf32>,
    return
  }
  func.func @transform_0(%arg0: i32) -> (i32, i32) {
    %c0_i32 = arith.constant 0 : i32
    %c0_i32_0 = arith.constant 0 : i32
    return %arg0, %c0_i32 : i32, i32
  }
  func.func @transform_1(%arg0: i32) -> (i32, i32) {
    %c0_i32 = arith.constant 0 : i32
    %c0_i32_0 = arith.constant 0 : i32
    return %arg0, %c0_i32 : i32, i32
  }
  func.func @transform_2(%arg0: i32) -> (i32, i32) {
    %c0_i32 = arith.constant 0 : i32
    %c0_i32_0 = arith.constant 0 : i32
    return %arg0, %c0_i32 : i32, i32
  }
}

</mosaic_0001>

<bundles_post_ra>
// kernel: tpu_custom_call.1
= control target key start
LH: loop header
LB: loop body
LE: loop exit
PB: predicated region body
PF: predicated region fallthrough
CT: control target
= control target key end

     0   :  { %vm20_vm0 = vcmask 261120   ;;  %s146_s0 = inlined_call_operand.vmem [shape: f32[8,32], index: 0, kind: input, shape index: {}]   ;;  %s147_s1 = inlined_call_operand.vmem [shape: s32[8,1], index: 1, kind: input, shape index: {}]   ;;  %s148_s2 = inlined_call_operand.hbm [shape: f32[1,8], index: 2, kind: output, shape index: {}]  }
   0x1   :  { %v12_v0 = vld [vmem:[%s146_s0] sm:$0xff] }
   0x2   :  { %7 = vsyncpa [#allocation3], 0  ;;  %v21_v1 = vsel %vm20_vm0, %v12_v0, -inf  ;;  %v107_v2 = vmov 0   ;;  %v13_v3 = vld [vmem:[%s147_s1] sm:$0xff]  ;;  %v14_v7 = vlaneseq  ;;  %v24_v12 = vsel %vm20_vm0, %v12_v0, 0.0 }
   0x3   :  { %78 = vset.pattern.permute.xlu0 %v107_v2  ;;  %s108_s0 = smov [#allocation2]   ;;  %vm60_vm2 = vcmask 57344  }
   0x4   :  { %22 = vmax.xlane.f32.xlu0 %v21_v1  ;;  %v15_v8 = vand.u32 127, %v14_v7  ;;  %v56_v23 = vshrl.u32 %v14_v7, 7  ;;  %s68_s1 = sshll.u32 %s108_s0, 4  ;;  %s69_s1 = int_to_ptr.vmem [resolvable:$true] %s68_s1 }
   0x5   :  { %s83_s13 = scalar_lea.vmem %s69_s1, 16  ;;  %s87_s14 = scalar_lea.vmem %s69_s1, 32 }
   0x6   :  { %v57_v27 = vsub.s32 %v15_v8, %v56_v23  ;;  %p84_p0 = scmp.ne.s32.totalorder %s69_s1, %s83_s13  ;;  %p88_p1 = scmp.lt.s32.totalorder %s69_s1, %s69_s1 }
   0x7   :  { %p89_p2 = scmp.lt.s32.totalorder %s87_s14, %s83_s13 }
   0x9   :  { %p90_p3 = por %p89_p2, %p88_p1 }
   0xb   :  { %p91_p4 = pnand %p90_p3, %p84_p0 }
  0x1a   :  { %17 = vperm.xlu0 %78, %v13_v3  }
  0x91   :  { %v23_v4 = vpop.xlane.xlu0 %22 }
  0x92   :  { %v31_v5 = vsub.f32 %v12_v0, %v23_v4 }
  0x94   :  { %v32_v6 = vmul.f32 1.442695, %v31_v5 }
  0x96   :  { %79 = vpow2.f32 %v32_v6 }
  0x99   :  { %v18_v9 = vpop.permute.xlu0 %17 }
  0x9a   :  { %vm19_vm1 = vcmp.eq.s32.totalorder %v15_v8, %v18_v9 }
  0x9b   :  { %v27_v13 = vsel %vm19_vm1, %v12_v0, 0.0 }
  0x9c   :  { %v28_v14 = vsel %vm20_vm0, %v27_v13, 0.0 }
  0xa0   :  { %v80_v10 = vpop.eup %79 }
  0xa1   :  { %v34_v11 = vsel %vm20_vm0, %v80_v10, 0.0 }
  0xa2   :  { %35 = vadd.xlane.f32.xlu1 %v34_v11 }
  0xa6   :  { %25 = vadd.xlane.f32.xlu1 %v24_v12 }
  0xaa   :  { %29 = vadd.xlane.f32.xlu1 %v28_v14 }
 0x12f   :  { %v36_v15 = vpop.xlane.xlu1 %35 }
 0x130   :  { %81 = vlog2.f32 %v36_v15 }
 0x133   :  { %v26_v16 = vpop.xlane.xlu1 %25 }
 0x137   :  { %v30_v19 = vpop.xlane.xlu1 %29 }
 0x13a   :  { %v82_v17 = vpop.eup %81 }
 0x13b   :  { %v38_v18 = vmul.f32 0.6931472, %v82_v17 }
 0x13d   :  { %v39_v20 = vadd.f32 %v38_v18, %v23_v4 }
 0x13f   :  { %v42_v21 = vmul.f32 32.0, %v39_v20  ;;  %v40_v22 = vsub.f32 %v30_v19, %v39_v20 }
 0x141   :  { %v43_v24 = vsub.f32 %v26_v16, %v42_v21  ;;  %v41_v26 = vmul.f32 0.9, %v40_v22 }
 0x143   :  { %v44_v25 = vmul.f32 0.003125, %v43_v24 }
 0x145   :  { %v45_v28 = vadd.f32 %v44_v25, %v41_v26 }
 0x147   :  { %v46_v29 = vsub.f32 0.0, %v45_v28 }
 0x149   :  { %v58_v30 = vrot.slane %v46_v29, %v57_v27 }
 0x14b   :  { %61 = vst.msk [vmem:[#allocation2] sm:$0x1] %vm60_vm2, %v58_v30 }
 0x14c   :  { %94 = shalt.err (!%p91_p4)
}
 0x14d   :  { %s95_s17 = scalar_lea.hbm %s148_s2, 16 }
 0x14e   :  { %p96_p5 = scmp.ne.s32.totalorder %s148_s2, %s95_s17  ;;  %p99_p6 = scmp.lt.u32.totalorder %s95_s17, %s148_s2 }
 0x150   :  { %p101_p7 = pnand %p99_p6, %p96_p5 }
 0x152   :  { %104 = shalt.err (!%p101_p7)
}
 0x153   :  { %71 = dma.vmem_to_hbm [thread:$0]  %s69_s1, 16, %s148_s2, [#allocation3]  }
 0x154   :  { %105 = dma.done.wait [#allocation3], 16  }
 0x155   :  { %106 = vsyncadd [#allocation3], 4294967280 }
 0x156   :  { %75 = vsyncpa [#allocation3], 1 }

</bundles_post_ra>
